<compile_context>
chip_gen: v6e
topology: v6e:2x2x1
jax: 0.10.0
libtpu: 0.0.40
codegen_flags: <defaults>
</compile_context>

<pallas_src>
import functools

import jax
import jax.numpy as jnp
from jax.experimental import pallas as pl
from jax.experimental.pallas import tpu as pltpu


def _round_up(x, m):
    return ((x + m - 1) // m) * m


def _choose_tile(dim_rounded, target, granule):
    """Pick a tile: multiple of `granule`, <= target when possible, and a
    divisor of `dim_rounded` when one exists (avoids round-up padding)."""
    target = max(target, granule)
    if dim_rounded <= target:
        return dim_rounded
    t0 = target - (target % granule)
    for t in range(t0, granule - 1, -granule):
        if dim_rounded % t == 0:
            return t
    return t0  # fall back: dim gets padded up to a multiple of the tile


# ----------------------------- kernels ------------------------------------- #

def _linear_kernel_single(x_ref, w_ref, b_ref, out_ref):
    """Whole (padded) problem in one VMEM block: out = x @ w_t + b."""
    out_ref[...] = (
        jnp.dot(x_ref[...], w_ref[...], preferred_element_type=jnp.float32)
        + b_ref[...].astype(jnp.float32)
    ).astype(out_ref.dtype)


def _linear_kernel_f32(x_ref, w_ref, b_ref, out_ref):
    """f32 output: accumulate straight into the VMEM-resident output block
    (its block index ignores k, so it stays resident across the reduction)."""
    k = pl.program_id(2)

    @pl.when(k == 0)
    def _():
        out_ref[...] = jnp.zeros_like(out_ref)

    out_ref[...] += jnp.dot(
        x_ref[...], w_ref[...], preferred_element_type=jnp.float32
    )

    @pl.when(k == pl.num_programs(2) - 1)
    def _():
        out_ref[...] += b_ref[...].astype(jnp.float32)


def _linear_kernel_acc(x_ref, w_ref, b_ref, out_ref, acc_ref):
    """Non-f32 output dtype: f32 scratch accumulator, cast on the last K step."""
    k = pl.program_id(2)

    @pl.when(k == 0)
    def _():
        acc_ref[...] = jnp.zeros_like(acc_ref)

    acc_ref[...] += jnp.dot(
        x_ref[...], w_ref[...], preferred_element_type=jnp.float32
    )

    @pl.when(k == pl.num_programs(2) - 1)
    def _():
        out_ref[...] = (
            acc_ref[...] + b_ref[...].astype(jnp.float32)
        ).astype(out_ref.dtype)


# ----------------------------- wrapper -------------------------------------- #

def prepare_params(weight, bias):
    """One-time parameter setup (outside the jitted forward).

    weight: [Out, In] (PyTorch nn.Linear layout), bias: [Out].
    Returns (weight_t, bias2d): weight transposed to [In, Out], cast to bf16,
    and zero-padded so both dims are multiples of 128; bias kept in f32,
    padded to the same Out, shaped [1, Out_padded].
    """
    weight = jnp.asarray(weight)
    bias = jnp.asarray(bias, dtype=jnp.float32)
    out_f, in_f = weight.shape
    in_r, out_r = _round_up(in_f, 128), _round_up(out_f, 128)
    w_t = weight.T.astype(jnp.bfloat16)                       # [In, Out], once
    w_t = jnp.pad(w_t, ((0, in_r - in_f), (0, out_r - out_f)))
    b = jnp.pad(bias, (0, out_r - out_f)).reshape(1, out_r)
    return w_t, b


@functools.partial(jax.jit, static_argnames=("out_features", "tm", "tn", "tk"))
def linear_forward(x, w_t, b, *, out_features, tm=512, tn=512, tk=1024):
    """x: [B, In] -> [B, out_features] in x.dtype.

    w_t: [In_pad, Out_pad] bf16 (pre-transposed / pre-padded via prepare_params)
    b:   [1, Out_pad] f32
    """
    B, In = x.shape
    Inr, Outr = w_t.shape
    assert Inr >= In and Inr % 128 == 0 and Outr % 128 == 0
    assert Outr >= out_features
    out_dtype = x.dtype

    # --- divisor-aware tile selection ---
    Br = _round_up(B, 16)                 # bf16 sublane packing on the batch dim
    tm = _choose_tile(Br, tm, 16)
    tn = _choose_tile(Outr, tn, 128)
    tk = _choose_tile(Inr, tk, 128)

    Bp = _round_up(Br, tm)
    Inp = _round_up(Inr, tk)
    Outp = _round_up(Outr, tn)

    # --- bf16 operands, zero padding (zeros contribute nothing to the dot) ---
    xb = x.astype(jnp.bfloat16)
    if Bp != B or Inp != In:
        xb = jnp.pad(xb, ((0, Bp - B), (0, Inp - In)))
    wp = w_t
    if Inp != Inr or Outp != Outr:
        wp = jnp.pad(wp, ((0, Inp - Inr), (0, Outp - Outr)))
    bp = b
    if Outp != Outr:
        bp = jnp.pad(bp, ((0, 0), (0, Outp - Outr)))

    grid = (Bp // tm, Outp // tn, Inp // tk)
    n_i, n_j, _ = grid

    out_item = jnp.dtype(out_dtype).itemsize
    cost = pl.CostEstimate(
        flops=2 * Bp * Inp * Outp,
        bytes_accessed=(
            n_j * Bp * Inp * 2        # x (bf16), re-streamed per Out tile
            + n_i * Inp * Outp * 2    # weight (bf16), re-streamed per batch tile
            + Outp * 4                # bias
            + Bp * Outp * out_item    # output
        ),
        transcendentals=0,
    )

    # --- single-block fast path: no grid, no accumulator, no pl.when ---
    if grid == (1, 1, 1):
        out_p = pl.pallas_call(
            _linear_kernel_single,
            out_shape=jax.ShapeDtypeStruct((Bp, Outp), out_dtype),
            cost_estimate=cost,
        )(xb, wp, bp)
        return out_p[:B, :out_features]

    # --- tiled accumulator path ---
    if out_dtype == jnp.float32:
        kernel = _linear_kernel_f32
        scratch = []
    else:
        kernel = _linear_kernel_acc
        scratch = [pltpu.VMEM((tm, tn), jnp.float32)]

    out_p = pl.pallas_call(
        kernel,
        out_shape=jax.ShapeDtypeStruct((Bp, Outp), out_dtype),
        grid_spec=pltpu.PrefetchScalarGridSpec(
            num_scalar_prefetch=0,
            grid=grid,
            in_specs=[
                pl.BlockSpec((tm, tk), lambda i, j, k: (i, k)),   # x (bf16)
                pl.BlockSpec((tk, tn), lambda i, j, k: (k, j)),   # weight.T (bf16)
                pl.BlockSpec((1, tn), lambda i, j, k: (0, j)),    # bias (f32)
            ],
            out_specs=pl.BlockSpec((tm, tn), lambda i, j, k: (i, j)),
            scratch_shapes=scratch,
        ),
        compiler_params=pltpu.CompilerParams(
            dimension_semantics=("parallel", "parallel", "arbitrary"),
            vmem_limit_bytes=48 * 1024 * 1024,
        ),
        cost_estimate=cost,
    )(xb, wp, bp)

    return out_p[:B, :out_features]


class LinearRegressionPallas:
    """Pallas/TPU equivalent of the PyTorch `linearRegression` module
    (nn.Linear with a frozen custom bias)."""

    def __init__(self, input_size, output_size, mybias, weight):
        assert weight.shape == (output_size, input_size)
        assert mybias.shape == (output_size,)
        self.out_features = int(output_size)
        # One-time setup of the frozen parameters (transpose / bf16 / 128-pad).
        self.w_t, self.b = prepare_params(weight, mybias)

    def __call__(self, x):
        return linear_forward(x, self.w_t, self.b, out_features=self.out_features)


# ------------------------------- demo --------------------------------------- #

if __name__ == "__main__":
    key = jax.random.PRNGKey(0)
    kx, kw, kb, kx2, kw2, kb2 = jax.random.split(key, 6)

    # --- small shapes implied by nn.Linear(inputSize, outputSize) ---
    B, IN_SIZE, OUT_SIZE = 8, 32, 16
    x = jax.random.normal(kx, (B, IN_SIZE), dtype=jnp.float32)
    weight = jax.random.normal(kw, (OUT_SIZE, IN_SIZE), dtype=jnp.float32) * 0.1
    mybias = jax.random.normal(kb, (OUT_SIZE,), dtype=jnp.float32)  # frozen bias

    model = LinearRegressionPallas(IN_SIZE, OUT_SIZE, mybias, weight)
    out = jax.block_until_ready(model(x))

    ref = x @ weight.T + mybias
    assert out.shape == (B, OUT_SIZE)
    # bf16 operands / f32 accumulation -> loosened tolerance vs f32 reference.
    assert jnp.allclose(out, ref, atol=2e-2, rtol=2e-2), (
        f"max err {jnp.max(jnp.abs(out - ref))}")

    # --- larger shapes to exercise the tiled accumulator path (multi-tile) ---
    B2, IN2, OUT2 = 384, 512, 640
    x2 = jax.random.normal(kx2, (B2, IN2), dtype=jnp.float32)
    w2 = jax.random.normal(kw2, (OUT2, IN2), dtype=jnp.float32) * 0.05
    b2 = jax.random.normal(kb2, (OUT2,), dtype=jnp.float32)

    model2 = LinearRegressionPallas(IN2, OUT2, b2, w2)
    out2 = jax.block_until_ready(model2(x2))

    ref2 = x2 @ w2.T + b2
    assert out2.shape == (B2, OUT2)
    assert jnp.allclose(out2, ref2, atol=5e-2, rtol=5e-2), (
        f"max err {jnp.max(jnp.abs(out2 - ref2))}")

    print("KERNEL_OK")
</pallas_src>

<mosaic_0001>
module attributes {stable_mosaic.version = 11 : i64} {
  func.func @_linear_kernel_single(%arg0: memref<16x128xbf16, #tpu.memory_space<vmem>>, %arg1: memref<128x128xbf16, #tpu.memory_space<vmem>>, %arg2: memref<1x128xf32, #tpu.memory_space<vmem>>, %arg3: memref<16x128xf32, #tpu.memory_space<vmem>>) attributes {dimension_semantics = [], scalar_prefetch = 0 : i64, scratch_operands = 0 : i64, tpu.core_type = #tpu.core_type<tc>} {
    %c0 = arith.constant 0 : index
    %c0_0 = arith.constant 0 : index
    %0 = vector.load %arg0[%c0, %c0_0] : memref<16x128xbf16, #tpu.memory_space<vmem>>, vector<16x128xbf16>
    %c0_1 = arith.constant 0 : index
    %c0_2 = arith.constant 0 : index
    %1 = vector.load %arg1[%c0_1, %c0_2] : memref<128x128xbf16, #tpu.memory_space<vmem>>, vector<128x128xbf16>
    %cst = arith.constant dense<0.000000e+00> : vector<16x128xf32>
    %2 = tpu.matmul %0, %1, %cst {dimension_numbers = #tpu.dot_dimension_numbers<[1], [0], [0], [1], [0, 0, 1, 1], [], []>} : vector<16x128xbf16>, vector<128x128xbf16>, vector<16x128xf32> -> vector<16x128xf32>
    %c0_3 = arith.constant 0 : index
    %c0_4 = arith.constant 0 : index
    %3 = vector.load %arg2[%c0_3, %c0_4] : memref<1x128xf32, #tpu.memory_space<vmem>>, vector<1x128xf32>
    %4 = vector.broadcast %3 : vector<1x128xf32> to vector<16x128xf32>
    %5 = arith.addf %2, %4 : vector<16x128xf32>
    %c0_5 = arith.constant 0 : index
    %c0_6 = arith.constant 0 : index
    %6 = vector.load %arg3[%c0_5, %c0_6] : memref<16x128xf32, #tpu.memory_space<vmem>>, vector<16x128xf32>
    tpu.vector_store %arg3[%c0_5, %c0_6], %5 {strides = array<i32>} : memref<16x128xf32, #tpu.memory_space<vmem>>, vector<16x128xf32>,
    return
  }
}

</mosaic_0001>

<bundles_post_ra>
// kernel: linear_forward.1
= control target key start
LH: loop header
LB: loop body
LE: loop exit
PB: predicated region body
PF: predicated region fallthrough
CT: control target
= control target key end

     0   :  { %8 = vsyncpa [#allocation3], 0  ;;  %s231_s12 = smov [#allocation2]   ;;  %s271_s0 = inlined_call_operand.vmem [shape: bf16[16,128], index: 0, kind: input, shape index: {}]   ;;  %s272_s1 = inlined_call_operand.hbm [shape: bf16[128,128], index: 1, kind: input, shape index: {}]   ;;  %s273_s2 = inlined_call_operand.vmem [shape: f32[1,128], index: 2, kind: input, shape index: {}]   ;;  %s274_s3 = inlined_call_operand.vmem [shape: f32[16,128], index: 3, kind: output, shape index: {}]  }
   0x1   :  { %s16_s13 = sshll.u32 %s231_s12, 4  ;;  %s17_s13 = int_to_ptr.vmem [resolvable:$true] %s16_s13 }
   0x2   :  { %s217_s14 = scalar_lea.vmem %s17_s13, 1024  ;;  %p222_p1 = scmp.lt.s32.totalorder %s17_s13, %s17_s13 }
   0x3   :  { %p218_p0 = scmp.ne.s32.totalorder %s17_s13, %s217_s14  ;;  %p223_p2 = scmp.lt.s32.totalorder %s217_s14, %s217_s14 }
   0x5   :  { %p224_p3 = por %p223_p2, %p222_p1 }
   0x7   :  { %p225_p4 = pnand %p224_p3, %p218_p0 }
   0x9   :  { %228 = shalt.err (!%p225_p4)
}
   0xa   :  { %s232_s15 = smov 64   ;;  %s233_s16 = smov 4  }
   0xb   :  { %22 = dma.hbm_to_vmem [thread:$0]  %s272_s1, 1024, %s17_s13, [#allocation3], %s232_s15, %s232_s15, %s233_s16  }
   0xc   :  { %229 = dma.done.wait [#allocation3], 1024  }
   0xd   :  { %230 = vsyncadd [#allocation3], 4294966272  ;;  %v234_v0 = vmov 0.0   ;;  %vm235_vm0 = vmmov 0   ;;  %v200_v1 = vld [vmem:[#allocation2 + $0x38] sm:$0xff]   ;;  %v201_v2 = vld [vmem:[#allocation2 + $0x30] sm:$0xff]  }
   0xe   :  { %175 = vmatprep.subr.bf16.mxu0 %v234_v0  ;;  %191 = vmatprep.mubr.msk.bf16.mxu0 %vm235_vm0, %v234_v0  ;;  %v202_v3 = vld [vmem:[#allocation2 + $0x28] sm:$0xff]   ;;  %v203_v4 = vld [vmem:[#allocation2 + $0x20] sm:$0xff]   ;;  %v204_v5 = vld [vmem:[#allocation2 + $0x18] sm:$0xff]  }
   0xf   :  { %176 = vmatpush3.bf16.msra.mxu0 %v200_v1  ;;  %v205_v6 = vld [vmem:[#allocation2 + $0x10] sm:$0xff]   ;;  %v206_v7 = vld [vmem:[#allocation2 + $0x8] sm:$0xff]   ;;  %v207_v8 = vld [vmem:[#allocation2] sm:$0xff]  }
  0x10   :  { %177 = vmatprep.subr.bf16.mxu0 %v234_v0  ;;  %v208_v9 = vld [vmem:[%s271_s0] sm:$0xff]  }
  0x11   :  { %v156_v10 = vld [vmem:[%s273_s2] ss:$0 sm:$0xff] }
  0x13   :  { %178 = vmatpush3.bf16.msra.mxu0 %v201_v2 }
  0x14   :  { %179 = vmatprep.subr.bf16.mxu0 %v234_v0 }
  0x17   :  { %180 = vmatpush3.bf16.msra.mxu0 %v202_v3 }
  0x18   :  { %181 = vmatprep.subr.bf16.mxu0 %v234_v0 }
  0x1b   :  { %182 = vmatpush3.bf16.msra.mxu0 %v203_v4 }
  0x1c   :  { %183 = vmatprep.subr.bf16.mxu0 %v234_v0 }
  0x1f   :  { %184 = vmatpush3.bf16.msra.mxu0 %v204_v5 }
  0x20   :  { %185 = vmatprep.subr.bf16.mxu0 %v234_v0 }
  0x23   :  { %186 = vmatpush3.bf16.msra.mxu0 %v205_v6 }
  0x24   :  { %187 = vmatprep.subr.bf16.mxu0 %v234_v0 }
  0x27   :  { %188 = vmatpush3.bf16.msra.mxu0 %v206_v7 }
  0x28   :  { %189 = vmatprep.subr.bf16.mxu0 %v234_v0 }
  0x2b   :  { %190 = vmatpush3.bf16.msra.mxu0 %v207_v8 }
  0x2e   :  { %192 = vmatmul.mubr.bf16.vlgmr.msra.gmra.mxu0 %v208_v9 }
  0xee   :  { %v142_v11 = vpop.f32.mrf.mxu0 }
  0xef   :  { %v143_v12 = vadd.f32 %v156_v10, %v142_v11 }
  0xf0   :  { %v193_v13 = vpop.f32.mrf.mxu0 }
  0xf1   :  { %149 = vst [vmem:[%s274_s3] sm:$0xff] %v143_v12 }
  0xf2   :  { %v145_v14 = vpop.f32.mrf.mxu0 }
  0xf3   :  { %v146_v15 = vadd.f32 %v156_v10, %v145_v14 }
  0xf4   :  { %v194_v16 = vpop.f32.mrf.mxu0 }
  0xf5   :  { %150 = vst [vmem:[%s274_s3 + $0x8] sm:$0xff] %v146_v15 }
  0xf6   :  { %155 = vsyncpa [#allocation3], 1 }

</bundles_post_ra>
